<compile_context>
chip_gen: v7x
topology: tpu7x:2x2x1
jax: 0.10.0
libtpu: 0.0.40
codegen_flags: <defaults>
</compile_context>

<pallas_src>
import jax
import jax.numpy as jnp
from jax.experimental import pallas as pl
from jax.experimental.pallas import tpu as pltpu


def _swish_kernel(beta_ref, x_ref, o_ref):
    # beta_ref: scalar-prefetch SMEM ref, shape (1,) f32
    # x_ref / o_ref: (tm, lane) VMEM tiles
    beta = beta_ref[0]
    xv = x_ref[...].astype(jnp.float32)
    # Stable sigmoid on the EUP: sigmoid(t) = 0.5 * (tanh(t/2) + 1).
    s = 0.5 * (jnp.tanh(0.5 * (beta * xv)) + 1.0)
    o_ref[...] = (xv * s).astype(o_ref.dtype)


_SMALL_FALLBACK_BYTES = 256 * 1024   # below this, plain XLA elementwise wins
_MIN_SPLIT_ROWS = 128                # split into >=2 grid steps above this
_MIN_BLOCK_ROWS = 64                 # never shrink blocks below ~64 rows
_MAX_TARGET_STEPS = 8


def _block_bytes_for_device() -> int:
    """~4 MiB blocks on v6e/v7x (32 MiB default scoped VMEM), ~2 MiB elsewhere
    (v5e's default scoped VMEM is 16 MiB; in+out double-buffered must fit)."""
    try:
        kind = jax.devices()[0].device_kind.lower()
    except Exception:
        kind = ""
    if "v6" in kind or "v7" in kind:
        return 4 * 1024 * 1024
    return 2 * 1024 * 1024


def _choose_lane(total: int):
    """Largest multiple-of-128 divisor of `total` that is <= 1024, or None."""
    if total % 128 != 0:
        return None
    q = total // 128
    for d in range(min(8, q), 0, -1):
        if q % d == 0:
            return 128 * d
    return 128


def _choose_tm(rows: int, tm_max: int) -> int:
    """Row-tile size: multiple of 32 (or the full dim), >=2 grid steps for
    large inputs, blocks never smaller than ~_MIN_BLOCK_ROWS rows."""
    if rows > tm_max:
        return tm_max
    if rows >= _MIN_SPLIT_ROWS:
        steps = min(_MAX_TARGET_STEPS, max(2, rows // _MIN_BLOCK_ROWS))
        tm = -(-rows // steps)           # ceil(rows / steps)
        tm = -(-tm // 32) * 32           # round up to a multiple of 32
        return min(tm, tm_max)
    return rows                          # single full-dim block (always legal)


def _swish_pallas(x2, beta_arr, block_bytes):
    rows, lane = x2.shape
    itemsize = jnp.dtype(x2.dtype).itemsize
    tm_max = max(32, (block_bytes // (lane * itemsize)) // 32 * 32)
    tm = _choose_tm(rows, tm_max)
    grid = (pl.cdiv(rows, tm),)

    n = rows * lane
    cost = pl.CostEstimate(
        flops=5 * n,
        transcendentals=n,
        bytes_accessed=2 * n * itemsize,
    )

    return pl.pallas_call(
        _swish_kernel,
        out_shape=jax.ShapeDtypeStruct((rows, lane), x2.dtype),
        grid_spec=pltpu.PrefetchScalarGridSpec(
            num_scalar_prefetch=1,
            grid=grid,
            in_specs=[pl.BlockSpec((tm, lane), lambda i, beta_ref: (i, 0))],
            out_specs=pl.BlockSpec((tm, lane), lambda i, beta_ref: (i, 0)),
        ),
        compiler_params=pltpu.CompilerParams(
            dimension_semantics=("parallel",)),
        cost_estimate=cost,
    )(beta_arr, x2)


def _swish_jnp(x, beta, out_dtype):
    xf = x.astype(jnp.float32)
    return (xf * jax.nn.sigmoid(beta * xf)).astype(out_dtype)


def swish(x, beta, *, min_pallas_bytes=_SMALL_FALLBACK_BYTES):
    """Swish: x * sigmoid(beta * x). x: any shape (e.g. NCHW). beta: scalar."""
    orig_shape = x.shape
    orig_dtype = x.dtype
    total = int(x.size)
    itemsize = jnp.dtype(orig_dtype).itemsize
    beta = jnp.asarray(beta, dtype=jnp.float32)

    # Tiny tensors: pallas_call launch overhead dominates; let XLA fuse it.
    if total == 0 or total * itemsize < min_pallas_bytes:
        return _swish_jnp(x, beta, orig_dtype)

    block_bytes = _block_bytes_for_device()
    beta_arr = beta.reshape(1)
    lane = _choose_lane(total)

    if lane is not None:
        # Common case: free reshape to a lane-dense slab, no padding / copies.
        out2 = _swish_pallas(x.reshape(total // lane, lane), beta_arr,
                             block_bytes)
        return out2.reshape(orig_shape)

    # Ragged: kernel on the 1024-aligned prefix, plain jnp on the short tail
    # (no full-array jnp.pad / trailing-slice round trips).
    lane = 1024
    aligned = (total // lane) * lane
    flat = x.reshape(-1)
    if aligned == 0:
        return _swish_jnp(x, beta, orig_dtype)
    out_head = _swish_pallas(flat[:aligned].reshape(aligned // lane, lane),
                             beta_arr, block_bytes)
    out_tail = _swish_jnp(flat[aligned:], beta, orig_dtype)
    return jnp.concatenate([out_head.reshape(-1), out_tail]).reshape(orig_shape)


if __name__ == "__main__":
    key0, key1, key2 = jax.random.split(jax.random.PRNGKey(0), 3)
    beta = jnp.float32(1.0)   # matches nn.Parameter(torch.tensor(1.0))

    def ref(x):
        xf = x.astype(jnp.float32)
        return (xf * jax.nn.sigmoid(beta * xf)).astype(x.dtype)

    # 1) Spec shape (NCHW activation). 8 KiB would normally take the
    #    small-input fallback, so force the Pallas path to exercise the kernel.
    x0 = jax.random.normal(key0, (2, 4, 16, 16), dtype=jnp.float32)
    y0 = jax.block_until_ready(swish(x0, beta, min_pallas_bytes=0))
    assert y0.shape == x0.shape and y0.dtype == x0.dtype
    assert jnp.max(jnp.abs(y0 - ref(x0))) < 1e-5

    # 2) Aligned medium input: zero-copy reshape path, multi-step grid.
    x1 = jax.random.normal(key1, (8, 16, 32, 32), dtype=jnp.float32)
    y1 = jax.block_until_ready(swish(x1, beta))
    assert jnp.max(jnp.abs(y1 - ref(x1))) < 1e-5

    # 3) Ragged medium input (odd H/W): aligned-prefix kernel + jnp tail,
    #    uneven trailing block in the grid.
    x2 = jax.random.normal(key2, (4, 16, 63, 65), dtype=jnp.float32)
    y2 = jax.block_until_ready(swish(x2, beta))
    assert y2.shape == x2.shape and y2.dtype == x2.dtype
    assert jnp.max(jnp.abs(y2 - ref(x2))) < 1e-5

    # 4) Small-input fallback path (default threshold).
    y0_fb = jax.block_until_ready(swish(x0, beta))
    assert jnp.max(jnp.abs(y0_fb - ref(x0))) < 1e-5

    print("KERNEL_OK")
</pallas_src>

<mosaic_0001>
module attributes {stable_mosaic.version = 11 : i64} {
  func.func @_swish_kernel(%arg0: i32, %arg1: memref<1xf32, #tpu.memory_space<smem>>, %arg2: memref<2x1024xf32, #tpu.memory_space<vmem>>, %arg3: memref<2x1024xf32, #tpu.memory_space<vmem>>) attributes {dimension_semantics = [#tpu.dimension_semantics<parallel>], iteration_bounds = array<i64: 1>, scalar_prefetch = 1 : i64, scratch_operands = 0 : i64, tpu.core_type = #tpu.core_type<tc>, window_params = [{transform_indices = @transform_0, window_bounds = array<i64: 2, 1024>}, {transform_indices = @transform_1, window_bounds = array<i64: 2, 1024>}]} {
    %c0 = arith.constant 0 : index
    %0 = memref.load %arg1[%c0] : memref<1xf32, #tpu.memory_space<smem>>
    %c0_0 = arith.constant 0 : index
    %c0_1 = arith.constant 0 : index
    %1 = vector.load %arg2[%c0_0, %c0_1] : memref<2x1024xf32, #tpu.memory_space<vmem>>, vector<2x1024xf32>
    %2 = vector.broadcast %0 : f32 to vector<2x1024xf32>
    %3 = arith.mulf %2, %1 : vector<2x1024xf32>
    %cst = arith.constant 5.000000e-01 : f32
    %4 = vector.broadcast %cst : f32 to vector<2x1024xf32>
    %5 = arith.mulf %4, %3 : vector<2x1024xf32>
    %6 = math.tanh %5 : vector<2x1024xf32>
    %cst_2 = arith.constant 1.000000e+00 : f32
    %7 = vector.broadcast %cst_2 : f32 to vector<2x1024xf32>
    %8 = arith.addf %6, %7 : vector<2x1024xf32>
    %cst_3 = arith.constant 5.000000e-01 : f32
    %9 = vector.broadcast %cst_3 : f32 to vector<2x1024xf32>
    %10 = arith.mulf %9, %8 : vector<2x1024xf32>
    %11 = arith.mulf %1, %10 : vector<2x1024xf32>
    %c0_4 = arith.constant 0 : index
    %c0_5 = arith.constant 0 : index
    %12 = vector.load %arg3[%c0_4, %c0_5] : memref<2x1024xf32, #tpu.memory_space<vmem>>, vector<2x1024xf32>
    tpu.vector_store %arg3[%c0_4, %c0_5], %11 {strides = array<i32>} : memref<2x1024xf32, #tpu.memory_space<vmem>>, vector<2x1024xf32>,
    return
  }
  func.func @transform_0(%arg0: i32, %arg1: memref<1xf32, #tpu.memory_space<smem>>) -> (i32, i32) {
    %c0_i32 = arith.constant 0 : i32
    %c0_i32_0 = arith.constant 0 : i32
    return %arg0, %c0_i32 : i32, i32
  }
  func.func @transform_1(%arg0: i32, %arg1: memref<1xf32, #tpu.memory_space<smem>>) -> (i32, i32) {
    %c0_i32 = arith.constant 0 : i32
    %c0_i32_0 = arith.constant 0 : i32
    return %arg0, %c0_i32 : i32, i32
  }
}

</mosaic_0001>

<bundles_post_ra>
// kernel: tpu_custom_call.1
= control target key start
LH: loop header
LB: loop body
LE: loop exit
PB: predicated region body
PF: predicated region fallthrough
CT: control target
= control target key end

     0   :  { %8 = vsyncpa [#allocation5], 0  ;;  %s154_s0 = inlined_call_operand.<no memory space> [shape: f32[1], index: 0, kind: input, shape index: {}]   ;;  %s155_s1 = inlined_call_operand.hbm [shape: f32[2,1024], index: 1, kind: input, shape index: {}]   ;;  %s156_s2 = inlined_call_operand.hbm [shape: f32[2,1024], index: 2, kind: output, shape index: {}]  }
   0x1   :  { %9 = vsyncpa [#allocation6], 0  ;;  %s110_s9 = smov [#allocation4]   ;;  %s62_s13 = scalar_lea.hbm %s155_s1, 256 }
   0x2   :  { %s16_s10 = sshll.u32 %s110_s9, 4  ;;  %p63_p0 = scmp.ne.s32.totalorder %s155_s1, %s62_s13  ;;  %s17_s10 = int_to_ptr.vmem [resolvable:$true] %s16_s10 }
   0x3   :  { %p66_p1 = scmp.lt.u32.totalorder %s62_s13, %s155_s1 }
   0x5   :  { %p68_p2 = pnand %p66_p1, %p63_p0 }
   0x7   :  { %71 = shalt.err (!%p68_p2)
}
   0x8   :  { %s72_s18 = scalar_lea.vmem %s17_s10, 256  ;;  %p77_p4 = scmp.lt.s32.totalorder %s17_s10, %s17_s10 }
   0x9   :  { %p73_p3 = scmp.ne.s32.totalorder %s17_s10, %s72_s18  ;;  %p78_p5 = scmp.lt.s32.totalorder %s72_s18, %s72_s18 }
   0xb   :  { %p79_p6 = por %p78_p5, %p77_p4 }
   0xd   :  { %p80_p7 = pnand %p79_p6, %p73_p3 }
   0xf   :  { %83 = shalt.err (!%p80_p7)
}
  0x10   :  { %19 = dma.hbm_to_vmem [thread:$0]  %s155_s1, 256, %s17_s10, [#allocation5]  }
  0x11   :  { %106 = dma.done.wait [#allocation5], 256  }
  0x12   :  { %107 = vsyncadd [#allocation5], 4294967040  ;;  %v26_v0 = vstv %s154_s0  ;;  %v24_v1 = vld [vmem:[#allocation4] sm:$0xff]  ;;  %v25_v2 = vld [vmem:[#allocation4 + $0x8] sm:$0xff]  ;;  %s111_s1 = smov [#allocation7]  }
  0x13   :  { %v27_v3 = vmul.f32 %v26_v0, %v24_v1  ;;  %v28_v4 = vmul.f32 %v26_v0, %v25_v2  ;;  %s47_s23 = sshll.u32 %s111_s1, 4  ;;  %s48_s23 = int_to_ptr.vmem [resolvable:$true] %s47_s23 }
  0x14   :  { %s84_s0 = scalar_lea.vmem %s48_s23, 256  ;;  %p89_p9 = scmp.lt.s32.totalorder %s48_s23, %s48_s23 }
  0x15   :  { %v29_v5 = vmul.f32 0.5, %v27_v3  ;;  %v30_v6 = vmul.f32 0.5, %v28_v4  ;;  %p85_p8 = scmp.ne.s32.totalorder %s48_s23, %s84_s0  ;;  %p90_p10 = scmp.lt.s32.totalorder %s84_s0, %s84_s0 }
  0x17   :  { %58 = vtanh.f32 %v29_v5  ;;  %p91_p11 = por %p90_p10, %p89_p9 }
  0x18   :  { %60 = vtanh.f32 %v30_v6 }
  0x19   :  { %p92_p12 = pnand %p91_p11, %p85_p8 }
  0x21   :  { %v59_v7 = vpop.eup %58 }
  0x22   :  { %v61_v8 = vpop.eup %60  ;;  %v33_v9 = vadd.f32 1.0, %v59_v7 }
  0x23   :  { %v34_v10 = vadd.f32 1.0, %v61_v8 }
  0x24   :  { %v35_v11 = vmul.f32 0.5, %v33_v9 }
  0x25   :  { %v36_v12 = vmul.f32 0.5, %v34_v10 }
  0x26   :  { %v37_v13 = vmul.f32 %v35_v11, %v24_v1 }
  0x27   :  { %v38_v14 = vmul.f32 %v36_v12, %v25_v2 }
  0x28   :  { %39 = vst [vmem:[#allocation7] sm:$0xff] %v37_v13 }
  0x29   :  { %40 = vst [vmem:[#allocation7 + $0x8] sm:$0xff] %v38_v14 }
  0x2a   :  { %95 = shalt.err (!%p92_p12)
}
  0x2b   :  { %s96_s26 = scalar_lea.hbm %s156_s2, 256 }
  0x2c   :  { %p97_p13 = scmp.ne.s32.totalorder %s156_s2, %s96_s26  ;;  %p100_p0 = scmp.lt.u32.totalorder %s96_s26, %s156_s2 }
  0x2e   :  { %p102_p1 = pnand %p100_p0, %p97_p13 }
  0x30   :  { %105 = shalt.err (!%p102_p1)
}
  0x31   :  { %50 = dma.vmem_to_hbm [thread:$0]  %s48_s23, 256, %s156_s2, [#allocation6]  }
  0x32   :  { %108 = dma.done.wait [#allocation6], 256  }
  0x33   :  { %109 = vsyncadd [#allocation6], 4294967040 }
  0x34   :  { %54 = vsyncpa [#allocation5], 1 }
  0x35   :  { %55 = vsyncpa [#allocation6], 1 }

</bundles_post_ra>
